<compile_context>
chip_gen: v6e
topology: v6e:2x2x1
jax: 0.10.0
libtpu: 0.0.40
codegen_flags: <defaults>
</compile_context>

<pallas_src>
import jax
import jax.numpy as jnp
from jax.experimental import pallas as pl
from jax.experimental.pallas import tpu as pltpu


def _normalize_kernel(scale_ref, bias_ref, x_ref, o_ref):
    # scale_ref / bias_ref: (tr, 1) f32 VMEM columns (lane-broadcast against the tile).
    # x_ref / o_ref: (tr, tc) VMEM tiles.
    x = x_ref[...].astype(jnp.float32)
    x = jnp.clip(x, 0.0, 1.0)
    y = x * scale_ref[...] + bias_ref[...]
    o_ref[...] = y.astype(o_ref.dtype)


def _round_down(v, m):
    return (v // m) * m


def _round_up(v, m):
    return ((v + m - 1) // m) * m


def _vmem_budget():
    """Return (per-block byte budget, vmem_limit_bytes) tuned to this chip's VMEM."""
    try:
        cap = getattr(pltpu.get_tpu_info(), "vmem_capacity_bytes", None)
    except Exception:
        cap = None
    if cap is None:
        cap = 64 * 1024 * 1024  # conservative: assume v7x-sized (64 MiB) VMEM
    if cap >= 96 * 1024 * 1024:                     # v5e / v6e: 128 MiB VMEM
        return 8 * 1024 * 1024, 64 * 1024 * 1024
    return 4 * 1024 * 1024, 48 * 1024 * 1024        # v7x: 64 MiB VMEM per TensorCore


def _select_tiles(R, HW, itemsize, block_budget_bytes):
    """Pick a (tr, tc) block shape: row dim multiple of 8 (or == R), lane dim multiple
    of 128 (or == HW). Ragged edges are handled by a cdiv grid + masking."""
    budget = max(block_budget_bytes // itemsize, 8 * 128)

    if 8 * HW <= budget:
        # Full rows: every block is a contiguous HBM slab; stores are fully lane-dense.
        tc = HW
        if R <= 8:
            tr = R                                  # full-extent row block
        else:
            tr = max(8, _round_down(budget // HW, 8))
            # Keep >= 2 row blocks so v7x's two TensorCores both get work.
            tr = min(tr, max(8, _round_down(R - 1, 8)))
    else:
        # Very long rows: split the lane dim into 128-aligned tiles.
        tr = 8 if R >= 8 else R
        tc = max(128, _round_down(budget // max(tr, 1), 128))

    # If the grid degenerated to a single block, split lanes in two (when possible) so
    # the work can still shard across both v7x TensorCores.
    if pl.cdiv(R, tr) * pl.cdiv(HW, tc) == 1 and HW >= 256:
        tc = _round_up(pl.cdiv(HW, 2), 128)
    return tr, tc


def input_normalize(x, new_mean, new_std, *, out_dtype=None, donate_x=False,
                    min_pallas_bytes=1 << 20):
    """x: (N, C, H, W); new_mean/new_std: (C,). Returns (clip(x, 0, 1) - mean) / std."""
    N, C, H, W = x.shape
    R, HW = N * C, H * W
    out_dtype = jnp.dtype(x.dtype) if out_dtype is None else jnp.dtype(out_dtype)
    in_itemsize = jnp.dtype(x.dtype).itemsize
    out_itemsize = out_dtype.itemsize

    # Tiny-input fast path: fixed pallas_call / grid-setup overhead dwarfs the work.
    if R * HW * in_itemsize < min_pallas_bytes:
        m = new_mean.astype(jnp.float32)[..., None, None]
        s = new_std.astype(jnp.float32)[..., None, None]
        y = (jnp.clip(x.astype(jnp.float32), 0.0, 1.0) - m) / s
        return y.astype(out_dtype)

    # Free-view flatten to a lane-dense 2D layout: one row per (n, c) pair, lanes = H*W.
    x2 = x.reshape(R, HW)

    # Fold the divide into per-channel scale/bias, precomputed in f32 so a bf16 I/O path
    # does not pick up extra per-channel rounding: o = clip(x) * (1/std) + (-mean/std).
    scale = 1.0 / new_std.astype(jnp.float32)
    bias = -new_mean.astype(jnp.float32) * scale
    scale_rows = jnp.tile(scale, N).reshape(R, 1)
    bias_rows = jnp.tile(bias, N).reshape(R, 1)

    block_budget, vmem_limit = _vmem_budget()
    tr, tc = _select_tiles(R, HW, max(in_itemsize, out_itemsize), block_budget)
    grid = (pl.cdiv(R, tr), pl.cdiv(HW, tc))

    cost = pl.CostEstimate(
        flops=3 * R * HW,
        transcendentals=0,
        bytes_accessed=R * HW * (in_itemsize + out_itemsize) + 8 * R,
    )
    aliases = {2: 0} if (donate_x and out_dtype == x.dtype) else {}

    # TODO(synk): if a v7x profile shows exposed DMA at these block sizes, try
    # pipeline_mode=pl.Buffered(3) on the x BlockSpec only.
    out2 = pl.pallas_call(
        _normalize_kernel,
        out_shape=jax.ShapeDtypeStruct((R, HW), out_dtype),
        grid=grid,
        in_specs=[
            pl.BlockSpec((tr, 1), lambda i, j: (i, 0)),    # per-row scale = 1/std (f32)
            pl.BlockSpec((tr, 1), lambda i, j: (i, 0)),    # per-row bias = -mean/std
            pl.BlockSpec((tr, tc), lambda i, j: (i, j)),   # x tile
        ],
        out_specs=pl.BlockSpec((tr, tc), lambda i, j: (i, j)),
        input_output_aliases=aliases,
        cost_estimate=cost,
        compiler_params=pltpu.CompilerParams(
            dimension_semantics=("parallel", "parallel"),
            vmem_limit_bytes=vmem_limit,
        ),
    )(scale_rows, bias_rows, x2)

    return out2.reshape(N, C, H, W)


def input_normalize_ref(x, new_mean, new_std):
    # Pure-JAX reference mirroring the PyTorch module (mean/std broadcast as (C,1,1)).
    m = new_mean[..., None, None]
    s = new_std[..., None, None]
    return (jnp.clip(x, 0.0, 1.0) - m) / s


if __name__ == "__main__":
    key = jax.random.PRNGKey(0)
    k1, k2 = jax.random.split(key)

    # Deterministic "buffer" initialization (synthetic, ImageNet-ish values).
    new_mean = jnp.array([0.485, 0.456, 0.406, 0.500], dtype=jnp.float32)
    new_std = jnp.array([0.229, 0.224, 0.225, 0.250], dtype=jnp.float32)

    # Small test shape; values slightly outside [0, 1] to exercise the clamp.
    N, C, H, W = 2, 4, 16, 16
    x = jax.random.uniform(k1, (N, C, H, W), dtype=jnp.float32,
                           minval=-0.2, maxval=1.2)

    # Force the Pallas path (the default tiny-input fast path would bypass it here).
    out = jax.block_until_ready(
        input_normalize(x, new_mean, new_std, min_pallas_bytes=0))
    ref = input_normalize_ref(x, new_mean, new_std)
    assert out.shape == (N, C, H, W)
    assert jnp.allclose(out, ref, atol=1e-5, rtol=1e-5), "mismatch vs reference"

    # Non-128-aligned spatial size -> exercises the cdiv grid / masked edge tile.
    mean3, std3 = new_mean[:3], new_std[:3]
    x_odd = jax.random.uniform(k2, (2, 3, 17, 19), dtype=jnp.float32,
                               minval=-0.2, maxval=1.2)
    out_odd = jax.block_until_ready(
        input_normalize(x_odd, mean3, std3, min_pallas_bytes=0))
    ref_odd = input_normalize_ref(x_odd, mean3, std3)
    assert jnp.allclose(out_odd, ref_odd, atol=1e-5, rtol=1e-5), "ragged-tile mismatch"

    # Default call (tiny-input fast path) must match as well.
    out_fast = jax.block_until_ready(input_normalize(x, new_mean, new_std))
    assert jnp.allclose(out_fast, ref, atol=1e-5, rtol=1e-5), "fast-path mismatch"

    print("KERNEL_OK")
</pallas_src>

<mosaic_0001>
module attributes {stable_mosaic.version = 11 : i64} {
  func.func @_normalize_kernel(%arg0: i32, %arg1: i32, %arg2: memref<8x1xf32, #tpu.memory_space<vmem>>, %arg3: memref<8x1xf32, #tpu.memory_space<vmem>>, %arg4: memref<8x128xf32, #tpu.memory_space<vmem>>, %arg5: memref<8x128xf32, #tpu.memory_space<vmem>>) attributes {dimension_semantics = [#tpu.dimension_semantics<parallel>, #tpu.dimension_semantics<parallel>], iteration_bounds = array<i64: 1, 2>, scalar_prefetch = 0 : i64, scratch_operands = 0 : i64, tpu.core_type = #tpu.core_type<tc>, window_params = [{transform_indices = @transform_0, window_bounds = array<i64: 8, 1>}, {transform_indices = @transform_1, window_bounds = array<i64: 8, 1>}, {transform_indices = @transform_2, window_bounds = array<i64: 8, 128>}, {transform_indices = @transform_3, window_bounds = array<i64: 8, 128>}]} {
    %c0 = arith.constant 0 : index
    %c0_0 = arith.constant 0 : index
    %0 = vector.load %arg4[%c0, %c0_0] : memref<8x128xf32, #tpu.memory_space<vmem>>, vector<8x128xf32>
    %cst = arith.constant 0.000000e+00 : f32
    %cst_1 = arith.constant 1.000000e+00 : f32
    %1 = vector.broadcast %cst : f32 to vector<8x128xf32>
    %2 = arith.maximumf %1, %0 : vector<8x128xf32>
    %3 = vector.broadcast %cst_1 : f32 to vector<8x128xf32>
    %4 = arith.minimumf %3, %2 : vector<8x128xf32>
    %c0_2 = arith.constant 0 : index
    %c0_3 = arith.constant 0 : index
    %5 = vector.load %arg2[%c0_2, %c0_3] : memref<8x1xf32, #tpu.memory_space<vmem>>, vector<8x1xf32>
    %6 = vector.broadcast %5 : vector<8x1xf32> to vector<8x128xf32>
    %7 = arith.mulf %4, %6 : vector<8x128xf32>
    %c0_4 = arith.constant 0 : index
    %c0_5 = arith.constant 0 : index
    %8 = vector.load %arg3[%c0_4, %c0_5] : memref<8x1xf32, #tpu.memory_space<vmem>>, vector<8x1xf32>
    %9 = vector.broadcast %8 : vector<8x1xf32> to vector<8x128xf32>
    %10 = arith.addf %7, %9 : vector<8x128xf32>
    %c0_6 = arith.constant 0 : index
    %c0_7 = arith.constant 0 : index
    %11 = vector.load %arg5[%c0_6, %c0_7] : memref<8x128xf32, #tpu.memory_space<vmem>>, vector<8x128xf32>
    tpu.vector_store %arg5[%c0_6, %c0_7], %10 {strides = array<i32>} : memref<8x128xf32, #tpu.memory_space<vmem>>, vector<8x128xf32>,
    return
  }
  func.func @transform_0(%arg0: i32, %arg1: i32) -> (i32, i32) {
    %c0_i32 = arith.constant 0 : i32
    %c0_i32_0 = arith.constant 0 : i32
    return %arg0, %c0_i32 : i32, i32
  }
  func.func @transform_1(%arg0: i32, %arg1: i32) -> (i32, i32) {
    %c0_i32 = arith.constant 0 : i32
    %c0_i32_0 = arith.constant 0 : i32
    return %arg0, %c0_i32 : i32, i32
  }
  func.func @transform_2(%arg0: i32, %arg1: i32) -> (i32, i32) {
    %c0_i32 = arith.constant 0 : i32
    return %arg0, %arg1 : i32, i32
  }
  func.func @transform_3(%arg0: i32, %arg1: i32) -> (i32, i32) {
    %c0_i32 = arith.constant 0 : i32
    return %arg0, %arg1 : i32, i32
  }
}

</mosaic_0001>

<bundles_post_ra>
// kernel: tpu_custom_call.1
= control target key start
LH: loop header
LB: loop body
LE: loop exit
PB: predicated region body
PF: predicated region fallthrough
CT: control target
= control target key end

     0   :  { %8 = vsyncpa [#allocation3], 0  ;;  %s642_s0 = inlined_call_operand.vmem [shape: f32[8,1], index: 0, kind: input, shape index: {}]   ;;  %s643_s1 = inlined_call_operand.vmem [shape: f32[8,1], index: 1, kind: input, shape index: {}]   ;;  %s644_s2 = inlined_call_operand.vmem [shape: f32[8,256], index: 2, kind: input, shape index: {}]   ;;  %s645_s3 = inlined_call_operand.hbm [shape: f32[8,256], index: 3, kind: output, shape index: {}]  }
   0x1   :  { %10 = vsyncpa [#allocation3 + $0x1], 0  ;;  %s537_s12 = smov 0   ;;  %s539_s13 = smov 0  }
   0x2   :  { %s541_s14 = smov 0   ;;  %s543_s15 = smov 0  }
   0x3   :  { %s545_s16 = smov 0   ;;  %s547_s17 = smov 0  }
   0x4 LB: > { %s367_s18 = sadd.s32 4294967295, %s513_s17   ;;  %s368_s19 = sadd.s32 4294967294, %s513_s17   ;;  %s513_s17 = sphi %s547_s17, %s16_s17   ;;  %s509_s16 = sphi %s545_s16, %s652_s16   ;;  %s505_s15 = sphi %s543_s15, %s651_s15   ;;  %s501_s14 = sphi %s541_s14, %s650_s14   ;;  %s497_s13 = sphi %s539_s13, %s649_s13   ;;  %s493_s12 = sphi %s537_s12, %s648_s12  }
   0x5   : > { %s25_s20 = sadd.s32 1, %s509_s16  ;;  %s117_s21 = sadd.s32 1, %s501_s14 }
   0x6   : > { %p26_p0 = scmp.ge.s32.totalorder %s25_s20, 2  ;;  %p127_p1 = scmp.ne.s32.totalorder %s501_s14, %s497_s13 }
   0x7   : > { %p128_p2 = scmp.eq.s32.totalorder %s367_s18, 1  ;;  %p133_p3 = scmp.ne.s32.totalorder %s497_s13, %s493_s12 }
   0x8   : > { %s654_s20 = smov (%p26_p0, %s25_s20), 0  ;;  %p134_p5 = scmp.eq.s32.totalorder %s368_s19, 1 }
   0x9   : > { %p577_p4 = por %p128_p2, %p127_p1  ;;  %s113_s23 = ssub.s32 %s509_s16, %s654_s20 }
   0xa   : > { %p373_p6 = scmp.ge.s32.totalorder %s513_s17, 1  ;;  %p115_p7 = scmp.eq.s32.totalorder %s113_s23, 0 }
   0xb   : > { %p584_p8 = por %p134_p5, %p133_p3  ;;  %p177_p9 = scmp.lt.s32.totalorder %s513_s17, 3 }
   0xc   : > { %s590_s25 = scalar_select %p115_p7, %s501_s14, %s117_s21  }
   0xd   : > { %p178_p10 = pnand %p373_p6, %p177_p9 }
   0xe   : > { %p222_p11 = scmp.lt.s32.totalorder (!%p178_p10), %s505_s15, 1  ;;  %s209_s8 = sand.u32 (!%p178_p10), 1, %s497_s13  }
   0xf   : > { %181 = sbr.rel (%p178_p10) target bundleno = 165 (0xa5), region = 32  ;;  %s374_s9 = sshll.u32 (!%p178_p10), %s209_s8, 3 }
  0x10   : > { %s377_s10 = sshll.u32 (!%p178_p10), %s505_s15, 7  ;;  %s211_s11 = scalar_lea.vmem (!%p178_p10), [#allocation2], %s374_s9 }
  0x11   : > { %s262_s18 = sshll.u32 (!%p178_p10), %s211_s11, 4  ;;  %s260_s23 = scalar_lea.hbm (!%p178_p10), %s645_s3, %s377_s10  ;;  %s263_s18 = int_to_ptr.vmem [resolvable:$true] %s262_s18 }
  0x12   : > { %s247_s26 = scalar_lea.sflag (!%p178_p10), [#allocation3], %s209_s8  ;;  %s437_s27 = scalar_lea.vmem (!%p178_p10), %s263_s18, 128 }
  0x13   : > { %p438_p12 = scmp.ne.s32.totalorder (!%p178_p10), %s263_s18, %s437_s27  ;;  %s516_s28 = smov (!%p178_p10), [#allocation2]  }
  0x14   : > { %v231_v0 = vld [vmem:[%s642_s0] sm:$0xff]  ;;  %v515_v1 = vmov 0   ;;  %s223_s30 = scalar_select %p222_p11, %s505_s15, 1 }
  0x15   : > { %436 = vset.pattern.permute.xlu0 %v515_v1  ;;  %v238_v2 = vld [vmem:[%s643_s1] sm:$0xff]  ;;  %p439_p13 = pnand %p438_p12, %p577_p4  ;;  %s441_s29 = sshll.u32 %s516_s28, 4  ;;  %s442_s29 = int_to_ptr.vmem [resolvable:$false] %s441_s29 }
  0x16   : > { %234 = vperm.xlu0 %436, %v231_v0   ;;  %s375_s4 = sshll.u32 %s223_s30, 3  ;;  %s443_s15 = scalar_lea.vmem %s442_s29, 256 }
  0x17   : > { %s227_s7 = scalar_lea.vmem %s644_s2, %s375_s4  ;;  %p440_p0 = pneg %p439_p13 }
  0x18   : > { %v228_v3 = vld [vmem:[%s227_s7] sm:$0xff]  ;;  %p444_p1 = scmp.lt.s32.totalorder %s263_s18, %s442_s29  ;;  %p445_p2 = scmp.lt.s32.totalorder %s443_s15, %s437_s27 }
  0x19   : > { %v229_v4 = vmax.f32 %v228_v3, 0.0 }
  0x1a   : > { %241 = vperm.xlu0 %436, %v238_v2   ;;  %p446_p3 = por %p445_p2, %p444_p1 }
  0x1b   : > { %v230_v5 = vmin.f32 %v229_v4, 1.0 }
  0x1c   : > { %p447_p5 = pnand %p446_p3, %p440_p0 }
  0x91   : > { %v235_v6 = vpop.permute.xlu0 %234 }
  0x92   : > { %v237_v7 = vmul.f32 %v235_v6, %v230_v5 }
  0x95   : > { %v242_v8 = vpop.permute.xlu0 %241 }
  0x96   : > { %v244_v9 = vadd.f32 %v242_v8, %v237_v7 }
  0x98   : > { %245 = vst [vmem:[%s211_s11] sm:$0xff] %v244_v9 }
  0x99   : > { %450 = shalt.err (!%p447_p5)
}
  0x9a   : > { %s451_s30 = scalar_lea.hbm %s260_s23, 128  ;;  %s455_s6 = scalar_lea.hbm %s645_s3, 256 }
  0x9b   : > { %p452_p6 = scmp.ne.s32.totalorder %s260_s23, %s451_s30  ;;  %p456_p10 = scmp.lt.s32.totalorder %s260_s23, %s645_s3 }
  0x9c   : > { %p457_p11 = scmp.lt.s32.totalorder %s455_s6, %s451_s30 }
  0x9d   : > { %p453_p7 = pnand %p452_p6, %p577_p4 }
  0x9e   : > { %p458_p12 = por %p457_p11, %p456_p10 }
  0x9f   : > { %p454_p9 = pneg %p453_p7 }
  0xa1   : > { %p459_p13 = pnand %p458_p12, %p454_p9 }
  0xa3   : > { %462 = shalt.err (!%p459_p13)
}
  0xa4   : > { %380 = dma.vmem_to_hbm [thread:$0]  (%p577_p4), %s263_s18, 128, %s260_s23, %s247_s26  }
  0xa5 PF: > { %p386_p0 = scmp.ge.s32.totalorder %s513_s17, 2  ;;  %s274_s9 = sand.u32 1, %s493_s12  }
  0xa6   : > { %s275_s10 = scalar_lea.sflag [#allocation3], %s274_s9 }
  0xa7   : > { %p383_p1 = pnand %p386_p0, %p584_p8 }
  0xa9   : > { %p384_p2 = pneg %p383_p1 }
  0xab   : > { %488 = dma.done.wait (%p384_p2), %s275_s10, 128  }
  0xac   : > { %490 = vsyncadd (%p384_p2), %s275_s10, 4294967168  ;;  %s16_s17 = sadd.s32 1, %s513_s17   ;;  %s648_s12 = smov %s497_s13 }
  0xad   : > { %p13_p3 = scmp.ge.s32.totalorder %s16_s17, 4   ;;  %s649_s13 = smov %s501_s14 }
  0xae   : > { %s650_s14 = smov %s590_s25  ;;  %s651_s15 = smov %s509_s16 }
  0xaf   : > { %s652_s16 = smov %s654_s20  ;;  %15 = sbr.rel (!%p13_p3) target bundleno = 4 (0x4), region = 73 }
  0xb4   :  { %280 = vsyncpa [#allocation3], 1 }
  0xb5   :  { %282 = vsyncpa [#allocation3 + $0x1], 1 }

</bundles_post_ra>
